<compile_context>
chip_gen: v7x
topology: tpu7x:2x2x1
jax: 0.10.0
libtpu: 0.0.40
codegen_flags: <defaults>
</compile_context>

<pallas_src>
import functools

import numpy as np

import jax
import jax.numpy as jnp
from jax.experimental import pallas as pl
from jax.experimental.pallas import tpu as pltpu


# ----------------------------- Pallas kernel -------------------------------

def _upconv_kernel(a_ref, x_ref, m_ref, shift_ref, o_ref, b_ref, *, guard_b):
    """Fused {x2 bilinear upsample, 3x3 conv, BN affine, ReLU} for one
    (batch, row-tile) grid step.

    a_ref:     (Th, 3*Hp)           bf16  row-interp windows, ky-concatenated
                                          (zero rows/cols encode vertical pad)
    x_ref:     (Hp, W*Cin)          bf16  low-res input, W and Cin folded on lanes
                                          (rows padded with zeros to Hp = ceil8(H))
    m_ref:     (3, W*Cin, Wo*Cout)  bf16  col-upsample * 3x3 taps * BN-scale, per ky
    shift_ref: (1, Wo*Cout)         f32   fused conv-bias / BN shift
    o_ref:     (Th, Wo*Cout)        f32   output rows, Wo and Cout folded on lanes
    b_ref:     (3*Hp, Wo*Cout)      bf16  scratch: B_ky = X @ M_ky, stacked over ky
    """
    hp = x_ref.shape[0]

    def compute_b():
        x = x_ref[...]                                    # (Hp, W*Cin) bf16
        for ky in range(3):                               # static unroll
            bk = jnp.dot(x, m_ref[ky], preferred_element_type=jnp.float32)
            b_ref[ky * hp:(ky + 1) * hp, :] = bk.astype(b_ref.dtype)

    if guard_b:
        # B depends only on the batch element; row-tiles (inner grid axis,
        # "arbitrary") reuse the scratch computed at t == 0.
        pl.when(pl.program_id(1) == 0)(compute_b)
    else:
        compute_b()

    # Row upsample + vertical taps/pad + accumulation: one wide matmul.
    acc = jnp.dot(a_ref[...], b_ref[...], preferred_element_type=jnp.float32)
    o_ref[...] = jnp.maximum(acc + shift_ref[...], 0.0).astype(o_ref.dtype)


# ------------------------------ JAX glue ------------------------------------

def _interp_matrix_np(n_in, n_out):
    """(n_out, n_in) 1-D bilinear interpolation matrix, align_corners=True."""
    m = np.zeros((n_out, n_in), np.float32)
    if n_in == 1 or n_out == 1:
        m[:, 0] = 1.0
        return m
    src = np.arange(n_out, dtype=np.float64) * (n_in - 1) / (n_out - 1)
    i0 = np.clip(np.floor(src).astype(np.int64), 0, n_in - 2)
    frac = (src - i0).astype(np.float32)
    m[np.arange(n_out), i0] = 1.0 - frac
    m[np.arange(n_out), i0 + 1] = frac
    return m


def _pick_row_tile(ho, max_rows):
    """Largest divisor of ho <= max_rows that is a multiple of 8 (or == ho)."""
    divisors = [d for d in range(min(ho, max_rows), 0, -1) if ho % d == 0]
    good = [d for d in divisors if d % 8 == 0 or d == ho]
    if good:
        return good[0]
    return ho   # block == full dim is always a legal BlockSpec


@functools.partial(jax.jit, static_argnames=("scale_factor",))
def upconv_forward(x_nchw, w_oihw, conv_b, gamma, beta, run_mean, run_var,
                   scale_factor=2, eps=1e-5):
    """Matches UpConv(in_c, out_c, mode='bilinear', with_conv=True).forward (eval BN)."""
    n, cin, hi, wi = x_nchw.shape
    cout = w_oihw.shape[0]
    ho, wo = hi * scale_factor, wi * scale_factor
    wc, owc = wi * cin, wo * cout
    hi_p = -(-hi // 8) * 8                                # rows padded to x8 sublanes

    # ---- layout glue: NCHW -> (N, Hp, W*Cin), bf16, lane-folded -------------
    x_nhwc = jnp.transpose(x_nchw, (0, 2, 3, 1)).astype(jnp.float32)
    x2d = x_nhwc.reshape(n, hi, wc).astype(jnp.bfloat16)
    if hi_p != hi:
        x2d = jnp.pad(x2d, ((0, 0), (0, hi_p - hi), (0, 0)))

    # ---- row tiling ----------------------------------------------------------
    row_cap = max(8, min(256, (512 * 1024) // max(1, owc * 4)))
    th = _pick_row_tile(ho, row_cap)
    tn = ho // th
    guard_b = not (n == 1 and tn > 1)        # if no batch parallelism, let the
    t_sem = "arbitrary" if (guard_b and tn > 1) else "parallel"  # row axis feed megacore

    # ---- trace-time constants: row interpolation + vertical pad -------------
    a_h = _interp_matrix_np(hi, ho)                       # (Ho, H)
    a_h_pad = np.zeros((ho + 2, hi), np.float32)          # zero rows = vertical pad
    a_h_pad[1:ho + 1] = a_h
    a_full = np.zeros((ho, 3 * hi_p), np.float32)         # ky-concatenated windows
    for ky in range(3):
        a_full[:, ky * hi_p:ky * hi_p + hi] = a_h_pad[ky:ky + ho]
    a_tiles = jnp.asarray(a_full.reshape(tn, th, 3 * hi_p), jnp.bfloat16)

    # ---- fold (column upsample o 3x3 taps o BN scale) into weights ----------
    a_w = _interp_matrix_np(wi, wo)                       # (Wo, W)
    a_w_pad = np.zeros((wo + 2, wi), np.float32)          # zero rows = horizontal pad
    a_w_pad[1:wo + 1] = a_w
    b_mat = np.stack([a_w_pad[kx:kx + wo] for kx in range(3)])   # (3, Wo, W)

    bn_scale = gamma / jnp.sqrt(run_var + eps)                        # (Cout,)
    w_kkio = jnp.transpose(w_oihw, (2, 3, 1, 0)).astype(jnp.float32)  # (ky,kx,ci,co)
    m = jnp.einsum("xow,yxic->ywioc", jnp.asarray(b_mat), w_kkio)     # (ky,w,ci,wo,co)
    m = m * bn_scale[None, None, None, None, :]
    m = m.reshape(3, wc, owc).astype(jnp.bfloat16)

    shift = (conv_b - run_mean) * bn_scale + beta                     # (Cout,)
    shift_flat = jnp.tile(shift, wo).reshape(1, owc).astype(jnp.float32)

    flops = n * (3 * 2 * hi_p * wc * owc + tn * 2 * th * (3 * hi_p) * owc)
    bytes_accessed = (n * hi_p * wc * 2 + ho * 3 * hi_p * 2
                      + 3 * wc * owc * 2 + owc * 4 + n * ho * owc * 4)

    out_flat = pl.pallas_call(
        functools.partial(_upconv_kernel, guard_b=guard_b),
        out_shape=jax.ShapeDtypeStruct((n, ho, owc), jnp.float32),
        grid_spec=pltpu.PrefetchScalarGridSpec(
            num_scalar_prefetch=0,
            grid=(n, tn),
            in_specs=[
                pl.BlockSpec((None, th, 3 * hi_p), lambda b, t: (t, 0, 0)),
                pl.BlockSpec((None, hi_p, wc), lambda b, t: (b, 0, 0)),
                pl.BlockSpec((3, wc, owc), lambda b, t: (0, 0, 0)),
                pl.BlockSpec((1, owc), lambda b, t: (0, 0)),
            ],
            out_specs=pl.BlockSpec((None, th, owc), lambda b, t: (b, t, 0)),
            scratch_shapes=[pltpu.VMEM((3 * hi_p, owc), jnp.bfloat16)],
        ),
        compiler_params=pltpu.CompilerParams(
            dimension_semantics=("parallel", t_sem),
            vmem_limit_bytes=64 * 1024 * 1024),
        cost_estimate=pl.CostEstimate(flops=int(flops), transcendentals=0,
                                      bytes_accessed=int(bytes_accessed)),
    )(a_tiles, x2d, m, shift_flat)

    # (N, Ho, Wo*Cout) -> (N, Ho, Wo, Cout): free (same linear order); then NCHW.
    out_nhwc = out_flat.reshape(n, ho, wo, cout)
    return jnp.transpose(out_nhwc, (0, 3, 1, 2))


# ------------------------------ reference -----------------------------------

def _upsample_bilinear_align_corners(x_nhwc, scale):
    """Bilinear upsample by integer `scale`, align_corners=True (NHWC, f32)."""
    n, h, w, c = x_nhwc.shape
    ho, wo = h * scale, w * scale

    def coords(n_in, n_out):
        if n_in == 1:
            idx0 = jnp.zeros((n_out,), jnp.int32)
            return idx0, idx0, jnp.zeros((n_out,), jnp.float32)
        src = jnp.arange(n_out, dtype=jnp.float32) * (n_in - 1) / (n_out - 1)
        i0 = jnp.clip(jnp.floor(src).astype(jnp.int32), 0, n_in - 2)
        frac = src - i0.astype(jnp.float32)
        return i0, i0 + 1, frac

    i0, i1, fh = coords(h, ho)
    xh = (jnp.take(x_nhwc, i0, axis=1) * (1.0 - fh)[None, :, None, None]
          + jnp.take(x_nhwc, i1, axis=1) * fh[None, :, None, None])

    j0, j1, fw = coords(w, wo)
    y = (jnp.take(xh, j0, axis=2) * (1.0 - fw)[None, None, :, None]
         + jnp.take(xh, j1, axis=2) * fw[None, None, :, None])
    return y


def _reference_forward(x_nchw, w_oihw, conv_b, gamma, beta, run_mean, run_var,
                       scale_factor=2, eps=1e-5):
    x = jnp.transpose(x_nchw, (0, 2, 3, 1)).astype(jnp.float32)
    up = _upsample_bilinear_align_corners(x, scale_factor)
    up_nchw = jnp.transpose(up, (0, 3, 1, 2))
    conv = jax.lax.conv_general_dilated(
        up_nchw, w_oihw.astype(jnp.float32),
        window_strides=(1, 1), padding=((1, 1), (1, 1)),
        dimension_numbers=("NCHW", "OIHW", "NCHW"))
    conv = conv + conv_b[None, :, None, None]
    bn = ((conv - run_mean[None, :, None, None])
          / jnp.sqrt(run_var[None, :, None, None] + eps)
          * gamma[None, :, None, None] + beta[None, :, None, None])
    return jnp.maximum(bn, 0.0)


# -------------------------------- main ---------------------------------------

if __name__ == "__main__":
    N, C_IN, C_OUT, H, W = 2, 4, 8, 16, 16
    SCALE = 2

    key = jax.random.PRNGKey(0)
    k_x, k_w, k_b, k_g, k_be, k_m, k_v = jax.random.split(key, 7)

    x = jax.random.normal(k_x, (N, C_IN, H, W), dtype=jnp.float32)

    w = jax.random.normal(k_w, (C_OUT, C_IN, 3, 3), dtype=jnp.float32) * 0.1
    b = jax.random.normal(k_b, (C_OUT,), dtype=jnp.float32) * 0.1
    gamma = 1.0 + 0.1 * jax.random.normal(k_g, (C_OUT,), dtype=jnp.float32)
    beta = 0.1 * jax.random.normal(k_be, (C_OUT,), dtype=jnp.float32)
    run_mean = 0.1 * jax.random.normal(k_m, (C_OUT,), dtype=jnp.float32)
    run_var = 1.0 + 0.1 * jnp.abs(jax.random.normal(k_v, (C_OUT,), dtype=jnp.float32))

    out = upconv_forward(x, w, b, gamma, beta, run_mean, run_var,
                         scale_factor=SCALE)
    out = jax.block_until_ready(out)

    ref = _reference_forward(x, w, b, gamma, beta, run_mean, run_var,
                             scale_factor=SCALE)
    assert out.shape == (N, C_OUT, H * SCALE, W * SCALE), out.shape
    max_err = float(jnp.max(jnp.abs(out - ref)))
    # bf16 activations / fused weights on the MXU (f32 accumulation) vs f32 ref.
    assert jnp.allclose(out, ref, atol=3e-2, rtol=3e-2), max_err

    print("KERNEL_OK")
</pallas_src>

<mosaic_0001>
module attributes {stable_mosaic.version = 11 : i64} {
  func.func @_upconv_kernel(%arg0: i32, %arg1: i32, %arg2: memref<1x32x48xbf16, #tpu.memory_space<vmem>>, %arg3: memref<1x16x64xbf16, #tpu.memory_space<vmem>>, %arg4: memref<3x64x256xbf16, #tpu.memory_space<vmem>>, %arg5: memref<1x256xf32, #tpu.memory_space<vmem>>, %arg6: memref<1x32x256xf32, #tpu.memory_space<vmem>>, %arg7: memref<48x256xbf16, #tpu.memory_space<vmem>>) attributes {dimension_semantics = [#tpu.dimension_semantics<parallel>, #tpu.dimension_semantics<parallel>], iteration_bounds = array<i64: 2, 1>, scalar_prefetch = 0 : i64, scratch_operands = 1 : i64, tpu.core_type = #tpu.core_type<tc>, window_params = [{transform_indices = @transform_0, window_bounds = array<i64: 1, 32, 48>}, {transform_indices = @transform_1, window_bounds = array<i64: 1, 16, 64>}, {pipeline_mode = #tpu.pipeline_mode<synchronous>, transform_indices = @transform_2, window_bounds = array<i64: 3, 64, 256>}, {pipeline_mode = #tpu.pipeline_mode<synchronous>, transform_indices = @transform_3, window_bounds = array<i64: 1, 256>}, {transform_indices = @transform_4, window_bounds = array<i64: 1, 32, 256>}]} {
    %c0_i32 = arith.constant 0 : i32
    %0 = arith.cmpi eq, %arg1, %c0_i32 : i32
    %1 = arith.extui %0 : i1 to i32
    %c0_i32_0 = arith.constant 0 : i32
    %2 = arith.cmpi ne, %1, %c0_i32_0 : i32
    scf.if %2 {
      %c0_11 = arith.constant 0 : index
      %c0_12 = arith.constant 0 : index
      %c0_13 = arith.constant 0 : index
      %15 = vector.load %arg3[%c0_11, %c0_12, %c0_13] : memref<1x16x64xbf16, #tpu.memory_space<vmem>>, vector<1x16x64xbf16>
      %16 = vector.shape_cast %15 : vector<1x16x64xbf16> to vector<16x64xbf16>
      %c0_14 = arith.constant 0 : index
      %c0_15 = arith.constant 0 : index
      %c0_16 = arith.constant 0 : index
      %17 = vector.load %arg4[%c0_14, %c0_15, %c0_16] : memref<3x64x256xbf16, #tpu.memory_space<vmem>>, vector<1x64x256xbf16>
      %18 = vector.shape_cast %17 : vector<1x64x256xbf16> to vector<64x256xbf16>
      %cst_17 = arith.constant dense<0.000000e+00> : vector<16x256xf32>
      %19 = tpu.matmul %16, %18, %cst_17 {dimension_numbers = #tpu.dot_dimension_numbers<[1], [0], [0], [1], [0, 0, 1, 1], [], []>} : vector<16x64xbf16>, vector<64x256xbf16>, vector<16x256xf32> -> vector<16x256xf32>
      %20 = arith.truncf %19 : vector<16x256xf32> to vector<16x256xbf16>
      %c0_18 = arith.constant 0 : index
      %c0_19 = arith.constant 0 : index
      %21 = vector.load %arg7[%c0_18, %c0_19] : memref<48x256xbf16, #tpu.memory_space<vmem>>, vector<16x256xbf16>
      tpu.vector_store %arg7[%c0_18, %c0_19], %20 {strides = array<i32>} : memref<48x256xbf16, #tpu.memory_space<vmem>>, vector<16x256xbf16>,
      %c1 = arith.constant 1 : index
      %c0_20 = arith.constant 0 : index
      %c0_21 = arith.constant 0 : index
      %22 = vector.load %arg4[%c1, %c0_20, %c0_21] : memref<3x64x256xbf16, #tpu.memory_space<vmem>>, vector<1x64x256xbf16>
      %23 = vector.shape_cast %22 : vector<1x64x256xbf16> to vector<64x256xbf16>
      %cst_22 = arith.constant dense<0.000000e+00> : vector<16x256xf32>
      %24 = tpu.matmul %16, %23, %cst_22 {dimension_numbers = #tpu.dot_dimension_numbers<[1], [0], [0], [1], [0, 0, 1, 1], [], []>} : vector<16x64xbf16>, vector<64x256xbf16>, vector<16x256xf32> -> vector<16x256xf32>
      %25 = arith.truncf %24 : vector<16x256xf32> to vector<16x256xbf16>
      %c16 = arith.constant 16 : index
      %c0_23 = arith.constant 0 : index
      %26 = vector.load %arg7[%c16, %c0_23] : memref<48x256xbf16, #tpu.memory_space<vmem>>, vector<16x256xbf16>
      tpu.vector_store %arg7[%c16, %c0_23], %25 {strides = array<i32>} : memref<48x256xbf16, #tpu.memory_space<vmem>>, vector<16x256xbf16>,
      %c2 = arith.constant 2 : index
      %c0_24 = arith.constant 0 : index
      %c0_25 = arith.constant 0 : index
      %27 = vector.load %arg4[%c2, %c0_24, %c0_25] : memref<3x64x256xbf16, #tpu.memory_space<vmem>>, vector<1x64x256xbf16>
      %28 = vector.shape_cast %27 : vector<1x64x256xbf16> to vector<64x256xbf16>
      %cst_26 = arith.constant dense<0.000000e+00> : vector<16x256xf32>
      %29 = tpu.matmul %16, %28, %cst_26 {dimension_numbers = #tpu.dot_dimension_numbers<[1], [0], [0], [1], [0, 0, 1, 1], [], []>} : vector<16x64xbf16>, vector<64x256xbf16>, vector<16x256xf32> -> vector<16x256xf32>
      %30 = arith.truncf %29 : vector<16x256xf32> to vector<16x256xbf16>
      %c32 = arith.constant 32 : index
      %c0_27 = arith.constant 0 : index
      %31 = vector.load %arg7[%c32, %c0_27] : memref<48x256xbf16, #tpu.memory_space<vmem>>, vector<16x256xbf16>
      tpu.vector_store %arg7[%c32, %c0_27], %30 {strides = array<i32>} : memref<48x256xbf16, #tpu.memory_space<vmem>>, vector<16x256xbf16>,
    } else {
    }
    %c0 = arith.constant 0 : index
    %c0_1 = arith.constant 0 : index
    %c0_2 = arith.constant 0 : index
    %3 = vector.load %arg2[%c0, %c0_1, %c0_2] : memref<1x32x48xbf16, #tpu.memory_space<vmem>>, vector<1x32x48xbf16>
    %4 = vector.shape_cast %3 : vector<1x32x48xbf16> to vector<32x48xbf16>
    %c0_3 = arith.constant 0 : index
    %c0_4 = arith.constant 0 : index
    %5 = vector.load %arg7[%c0_3, %c0_4] : memref<48x256xbf16, #tpu.memory_space<vmem>>, vector<48x256xbf16>
    %cst = arith.constant dense<0.000000e+00> : vector<32x256xf32>
    %6 = tpu.matmul %4, %5, %cst {dimension_numbers = #tpu.dot_dimension_numbers<[1], [0], [0], [1], [0, 0, 1, 1], [], []>} : vector<32x48xbf16>, vector<48x256xbf16>, vector<32x256xf32> -> vector<32x256xf32>
    %c0_5 = arith.constant 0 : index
    %c0_6 = arith.constant 0 : index
    %7 = vector.load %arg5[%c0_5, %c0_6] : memref<1x256xf32, #tpu.memory_space<vmem>>, vector<1x256xf32>
    %8 = vector.broadcast %7 : vector<1x256xf32> to vector<32x256xf32>
    %9 = arith.addf %6, %8 : vector<32x256xf32>
    %cst_7 = arith.constant 0.000000e+00 : f32
    %10 = vector.broadcast %cst_7 : f32 to vector<32x256xf32>
    %11 = arith.maximumf %9, %10 : vector<32x256xf32>
    %c0_8 = arith.constant 0 : index
    %c0_9 = arith.constant 0 : index
    %c0_10 = arith.constant 0 : index
    %12 = vector.load %arg6[%c0_8, %c0_9, %c0_10] : memref<1x32x256xf32, #tpu.memory_space<vmem>>, vector<1x32x256xf32>
    %13 = vector.shape_cast %12 : vector<1x32x256xf32> to vector<32x256xf32>
    %14 = vector.shape_cast %11 : vector<32x256xf32> to vector<1x32x256xf32>
    tpu.vector_store %arg6[%c0_8, %c0_9, %c0_10], %14 {strides = array<i32>} : memref<1x32x256xf32, #tpu.memory_space<vmem>>, vector<1x32x256xf32>,
    return
  }
  func.func @transform_0(%arg0: i32, %arg1: i32) -> (i32, i32, i32) {
    %c0_i32 = arith.constant 0 : i32
    %c0_i32_0 = arith.constant 0 : i32
    %c0_i32_1 = arith.constant 0 : i32
    return %arg1, %c0_i32, %c0_i32_0 : i32, i32, i32
  }
  func.func @transform_1(%arg0: i32, %arg1: i32) -> (i32, i32, i32) {
    %c0_i32 = arith.constant 0 : i32
    %c0_i32_0 = arith.constant 0 : i32
    %c0_i32_1 = arith.constant 0 : i32
    return %arg0, %c0_i32, %c0_i32_0 : i32, i32, i32
  }
  func.func @transform_2(%arg0: i32, %arg1: i32) -> (i32, i32, i32) {
    %c0_i32 = arith.constant 0 : i32
    %c0_i32_0 = arith.constant 0 : i32
    %c0_i32_1 = arith.constant 0 : i32
    %c0_i32_2 = arith.constant 0 : i32
    return %c0_i32, %c0_i32_0, %c0_i32_1 : i32, i32, i32
  }
  func.func @transform_3(%arg0: i32, %arg1: i32) -> (i32, i32) {
    %c0_i32 = arith.constant 0 : i32
    %c0_i32_0 = arith.constant 0 : i32
    %c0_i32_1 = arith.constant 0 : i32
    return %c0_i32, %c0_i32_0 : i32, i32
  }
  func.func @transform_4(%arg0: i32, %arg1: i32) -> (i32, i32, i32) {
    %c0_i32 = arith.constant 0 : i32
    %c0_i32_0 = arith.constant 0 : i32
    return %arg0, %arg1, %c0_i32 : i32, i32, i32
  }
}

</mosaic_0001>

<bundles_post_ra>
// kernel: tile.8
= control target key start
LH: loop header
LB: loop body
LE: loop exit
PB: predicated region body
PF: predicated region fallthrough
CT: control target
= control target key end

     0   :  { %s40_s0 = inlined_call_operand.vmem [shape: f32[8], index: 0, kind: input, shape index: {}]   ;;  %s41_s1 = inlined_call_operand.vmem [shape: f32[32,8], index: 1, kind: output, shape index: {}]  }
   0x1   :  { %v4_v0 = vld [vmem:[%s40_s0] ss:$0 sm:$0xff] }
   0x2   :  { %5 = vst [vmem:[%s41_s1] sm:$0xff] %v4_v0  ;;  %12 = vst [vmem:[%s41_s1 + $0x8] sm:$0xff] %v4_v0 }
   0x3   :  { %13 = vst [vmem:[%s41_s1 + $0x10] sm:$0xff] %v4_v0  ;;  %14 = vst [vmem:[%s41_s1 + $0x18] sm:$0xff] %v4_v0 }

// kernel: tile.9
= control target key start
LH: loop header
LB: loop body
LE: loop exit
PB: predicated region body
PF: predicated region fallthrough
CT: control target
= control target key end

     0   :  { %s8_s6 = smov 3  ;;  %s22_s9 = smov 3  ;;  %s274_s0 = inlined_call_operand.vmem [shape: f32[32,8], index: 0, kind: input, shape index: {}]   ;;  %s275_s1 = inlined_call_operand.hbm [shape: f32[1,256], index: 1, kind: output, shape index: {}]  }
   0x1   :  { %v133_v0 = vld [vmem:[%s274_s0 + $0xf] ss:$16 sm:%s8_s6]   ;;  %s188_s10 = smov 120   ;;  %v135_v1 = vld [vmem:[%s274_s0 + $0xd] ss:$16 sm:%s22_s9]   ;;  %s15_s13 = smov 3 }
   0x2   :  { %10 = vrot.lane.b32.xlu0 %v133_v0, %s188_s10  ;;  %s189_s14 = smov 104   ;;  %v134_v2 = vld [vmem:[%s274_s0 + $0xe] ss:$16 sm:%s15_s13]   ;;  %s29_s17 = smov 3 }
   0x3   :  { %24 = vrot.lane.b32.xlu1 %v135_v1, %s189_s14  ;;  %v136_v3 = vld [vmem:[%s274_s0 + $0xc] ss:$16 sm:%s29_s17]   ;;  %s36_s20 = smov 3 }
   0x4   :  { %2 = vsyncpa [#allocation1], 0  ;;  %s43_s21 = smov 3  ;;  %s190_s22 = smov 112   ;;  %v137_v4 = vld [vmem:[%s274_s0 + $0xb] ss:$16 sm:%s36_s20]  }
   0x5   :  { %s191_s23 = smov 96   ;;  %v138_v5 = vld [vmem:[%s274_s0 + $0xa] ss:$16 sm:%s43_s21]   ;;  %s50_s28 = smov 3  ;;  %vm5_vm0 = vcmask 64512   ;;  %vm12_vm1 = vcmask 1048512  }
   0x6   :  { %17 = vrot.lane.b32.xlu0 %v134_v2, %s190_s22  ;;  %s57_s29 = smov 3  ;;  %s192_s30 = smov 88   ;;  %v139_v6 = vld [vmem:[%s274_s0 + $0x9] ss:$16 sm:%s50_s28]   ;;  %vm19_vm2 = vcmask 982912   ;;  %vm26_vm3 = vcmask 917312  }
   0x7   :  { %31 = vrot.lane.b32.xlu1 %v136_v3, %s191_s23  ;;  %s193_s2 = smov 80   ;;  %v140_v7 = vld [vmem:[%s274_s0 + $0x8] ss:$16 sm:%s57_s29]   ;;  %s64_s7 = smov 3  ;;  %vm33_vm4 = vcmask 851712   ;;  %vm40_vm5 = vcmask 786112  }
   0x8   :  { %s71_s8 = smov 3  ;;  %s194_s9 = smov 72   ;;  %v141_v8 = vld [vmem:[%s274_s0 + $0x7] ss:$16 sm:%s64_s7]   ;;  %vm47_vm6 = vcmask 720512   ;;  %vm54_vm7 = vcmask 654912  }
   0x9   :  { %s195_s10 = smov 64   ;;  %s3_s13 = smov 3  ;;  %v142_v9 = vld [vmem:[%s274_s0 + $0x6] ss:$16 sm:%s71_s8]   ;;  %vm61_vm8 = vcmask 589312   ;;  %vm68_vm9 = vcmask 523712  }
   0xa   :  { %38 = vrot.lane.b32.xlu0 %v137_v4, %s192_s30  ;;  %s78_s16 = smov 3  ;;  %v4_v10 = vld [vmem:[%s274_s0] ss:$16 sm:%s3_s13]   ;;  %s85_s19 = smov 3  ;;  %vm75_vm10 = vcmask 458112   ;;  %vm82_vm11 = vcmask 392512  }
   0xb   :  { %45 = vrot.lane.b32.xlu1 %v138_v5, %s193_s2  ;;  %6 = vst.msk [vmem:[#allocation2] ss:$8 sm:$0x3] %vm5_vm0, %v4_v10   ;;  %s196_s20 = smov 56   ;;  %s197_s21 = smov 48   ;;  %vm89_vm12 = vcmask 326912  }
   0xc   :  { %v143_v11 = vld [vmem:[%s274_s0 + $0x5] ss:$16 sm:%s78_s16]   ;;  %v144_v12 = vld [vmem:[%s274_s0 + $0x4] ss:$16 sm:%s85_s19]   ;;  %s92_s26 = smov 3  ;;  %s99_s27 = smov 3 }
   0xd   :  { %s198_s28 = smov 40   ;;  %s199_s29 = smov 32   ;;  %v145_v13 = vld [vmem:[%s274_s0 + $0x3] ss:$16 sm:%s92_s26]   ;;  %v146_v14 = vld [vmem:[%s274_s0 + $0x2] ss:$16 sm:%s99_s27]  }
   0xe   :  { %52 = vrot.lane.b32.xlu0 %v139_v6, %s194_s9  ;;  %s106_s5 = smov 3  ;;  %s200_s6 = smov 24   ;;  %vm96_vm13 = vcmask 261312   ;;  %vm103_vm14 = vcmask 195712   ;;  %vm110_vm15 = vcmask 130112  }
   0xf   :  { %59 = vrot.lane.b32.xlu1 %v140_v7, %s195_s10  ;;  %s201_s7 = smov 16   ;;  %v147_v15 = vld [vmem:[%s274_s0 + $0x1] ss:$16 sm:%s106_s5]   ;;  %s202_s0 = smov 8  }
  0x10   :  { %s203_s10 = smov [#allocation0]  }
  0x11   :  { %s127_s11 = sshll.u32 %s203_s10, 4  ;;  %s128_s11 = int_to_ptr.vmem [resolvable:$true] %s127_s11 }
  0x12   :  { %66 = vrot.lane.b32.xlu0 %v141_v8, %s196_s20  ;;  %s164_s12 = scalar_lea.vmem %s128_s11, 32  ;;  %p169_p1 = scmp.lt.s32.totalorder %s128_s11, %s128_s11 }
  0x13   :  { %73 = vrot.lane.b32.xlu1 %v142_v9, %s197_s21  ;;  %p165_p0 = scmp.ne.s32.totalorder %s128_s11, %s164_s12  ;;  %p170_p2 = scmp.lt.s32.totalorder %s164_s12, %s164_s12 }
  0x15   :  { %p171_p3 = por %p170_p2, %p169_p1 }
  0x16   :  { %80 = vrot.lane.b32.xlu0 %v143_v11, %s198_s28 }
  0x17   :  { %87 = vrot.lane.b32.xlu1 %v144_v12, %s199_s29  ;;  %p172_p4 = pnand %p171_p3, %p165_p0 }
  0x1a   :  { %94 = vrot.lane.b32.xlu0 %v145_v13, %s200_s6 }
  0x1b   :  { %101 = vrot.lane.b32.xlu1 %v146_v14, %s201_s7 }
  0x1e   :  { %108 = vrot.lane.b32.xlu0 %v147_v15, %s202_s0 }
  0x74   :  { %v11_v16 = vpop.permute.xlu0 %10  }
  0x75   :  { %13 = vst.msk [vmem:[#allocation2] ss:$8 sm:$0x3] %vm12_vm1, %v11_v16   ;;  %v25_v17 = vpop.permute.xlu1 %24  }
  0x78   :  { %v18_v18 = vpop.permute.xlu0 %17  }
  0x79   :  { %20 = vst.msk [vmem:[#allocation2] ss:$8 sm:$0x3] %vm19_vm2, %v18_v18   ;;  %v32_v19 = vpop.permute.xlu1 %31  }
  0x7a   :  { %27 = vst.msk [vmem:[#allocation2] ss:$8 sm:$0x3] %vm26_vm3, %v25_v17  }
  0x7b   :  { %34 = vst.msk [vmem:[#allocation2] ss:$8 sm:$0x3] %vm33_vm4, %v32_v19  }
  0x7c   :  { %v39_v20 = vpop.permute.xlu0 %38  }
  0x7d   :  { %41 = vst.msk [vmem:[#allocation2] ss:$8 sm:$0x3] %vm40_vm5, %v39_v20   ;;  %v46_v21 = vpop.permute.xlu1 %45  }
  0x7e   :  { %48 = vst.msk [vmem:[#allocation2] ss:$8 sm:$0x3] %vm47_vm6, %v46_v21  }
  0x80   :  { %v53_v22 = vpop.permute.xlu0 %52  }
  0x81   :  { %55 = vst.msk [vmem:[#allocation2] ss:$8 sm:$0x3] %vm54_vm7, %v53_v22   ;;  %v60_v23 = vpop.permute.xlu1 %59  }
  0x82   :  { %62 = vst.msk [vmem:[#allocation2] ss:$8 sm:$0x3] %vm61_vm8, %v60_v23  }
  0x84   :  { %v67_v24 = vpop.permute.xlu0 %66  }
  0x85   :  { %69 = vst.msk [vmem:[#allocation2] ss:$8 sm:$0x3] %vm68_vm9, %v67_v24   ;;  %v74_v25 = vpop.permute.xlu1 %73  }
  0x86   :  { %76 = vst.msk [vmem:[#allocation2] ss:$8 sm:$0x3] %vm75_vm10, %v74_v25  }
  0x88   :  { %v81_v26 = vpop.permute.xlu0 %80  }
  0x89   :  { %83 = vst.msk [vmem:[#allocation2] ss:$8 sm:$0x3] %vm82_vm11, %v81_v26   ;;  %v88_v27 = vpop.permute.xlu1 %87  }
  0x8a   :  { %90 = vst.msk [vmem:[#allocation2] ss:$8 sm:$0x3] %vm89_vm12, %v88_v27  }
  0x8c   :  { %v95_v28 = vpop.permute.xlu0 %94  }
  0x8d   :  { %97 = vst.msk [vmem:[#allocation2] ss:$8 sm:$0x3] %vm96_vm13, %v95_v28   ;;  %v102_v29 = vpop.permute.xlu1 %101  }
  0x8e   :  { %104 = vst.msk [vmem:[#allocation2] ss:$8 sm:$0x3] %vm103_vm14, %v102_v29  }
  0x90   :  { %v109_v30 = vpop.permute.xlu0 %108  }
  0x91   :  { %111 = vst.msk [vmem:[#allocation2] ss:$8 sm:$0x3] %vm110_vm15, %v109_v30  }
  0x98   :  { %v115_v31 = vld [vmem:[#allocation2] sm:$0x1]  ;;  %v119_v32 = vld [vmem:[#allocation2 + $0x8] sm:$0x1] }
  0x99   :  { %117 = vst [vmem:[#allocation0] sm:$0x1] %v115_v31  ;;  %122 = vst [vmem:[#allocation0 + $0x1] sm:$0x1] %v119_v32 }
  0x9a   :  { %175 = shalt.err (!%p172_p4)
}
  0x9b   :  { %s176_s15 = scalar_lea.hbm %s275_s1, 32 }
  0x9c   :  { %p177_p5 = scmp.ne.s32.totalorder %s275_s1, %s176_s15  ;;  %p180_p6 = scmp.lt.u32.totalorder %s176_s15, %s275_s1 }
  0x9e   :  { %p182_p7 = pnand %p180_p6, %p177_p5 }
  0xa0   :  { %185 = shalt.err (!%p182_p7)
}
  0xa1   :  { %130 = dma.vmem_to_hbm [thread:$0]  %s128_s11, 32, %s275_s1, [#allocation1]  }
  0xa2   :  { %186 = dma.done.wait [#allocation1], 32  }
  0xa3   :  { %187 = vsyncadd [#allocation1], 4294967264 }
  0xa4   :  { %132 = vsyncpa [#allocation1], 1 }

// kernel: upconv_forward.1
= control target key start
LH: loop header
LB: loop body
LE: loop exit
PB: predicated region body
PF: predicated region fallthrough
CT: control target
= control target key end

     0   :  { %9 = vsyncpa [#allocation4], 0  ;;  %s1551_s0 = inlined_call_operand.hbm [shape: bf16[1,32,48], index: 0, kind: input, shape index: {}]   ;;  %s1552_s1 = inlined_call_operand.hbm [shape: bf16[2,16,64], index: 1, kind: input, shape index: {}]   ;;  %s1553_s2 = inlined_call_operand.hbm [shape: bf16[3,64,256], index: 2, kind: input, shape index: {}]   ;;  %s1554_s3 = inlined_call_operand.hbm [shape: f32[1,256], index: 3, kind: input, shape index: {}]   ;;  %s1555_s4 = inlined_call_operand.hbm [shape: f32[2,32,256], index: 4, kind: output, shape index: {}]  }
   0x1   :  { %10 = vsyncpa [#allocation7], 0 }
   0x2   :  { %12 = vsyncpa [#allocation7 + $0x1], 0 }
   0x3   :  { %13 = vsyncpa [#allocation10], 0 }
   0x4   :  { %14 = vsyncpa [#allocation5], 0 }
   0x5   :  { %16 = vsyncpa [#allocation5 + $0x1], 0  ;;  %s1267_s15 = smov 0   ;;  %s1269_s16 = smov 0  }
   0x6   :  { %s1271_s17 = smov 0   ;;  %s1273_s18 = smov 0  }
   0x7   :  { %s1275_s19 = smov 0   ;;  %s1277_s20 = smov 0  }
   0x8 LB: > { %1563 = sst [smem:[#allocation17_spill]] %s1208_s15  ;;  %s1298_s21 = sadd.s32 4294967295, %s1228_s20   ;;  %s1228_s20 = sphi %s1277_s20, %s22_s20   ;;  %s1224_s19 = sphi %s1275_s19, %s1592_s19   ;;  %s1220_s18 = sphi %s1273_s18, %s1591_s18   ;;  %s1216_s17 = sphi %s1271_s17, %s1590_s17   ;;  %s1212_s16 = sphi %s1269_s16, %s1589_s16   ;;  %s1208_s15 = sphi %s1267_s15, %s1588_s15  }
   0x9   : > { %s827_s22 = sadd.s32 4294967294, %s1228_s20   ;;  %p74_p0 = scmp.ne.s32.totalorder %s1216_s17, %s1212_s16 }
   0xa   : > { %p75_p1 = scmp.eq.s32.totalorder %s1228_s20, 0  ;;  %p80_p2 = scmp.ne.s32.totalorder %s1212_s16, %s1208_s15 }
   0xb   : > { %p1556_p3 = scmp.eq.s32.totalorder %s1298_s21, 0  ;;  %p148_p5 = scmp.eq.s32.totalorder %s1298_s21, 1 }
   0xc   : > { %p1307_p4 = por %p75_p1, %p74_p0  ;;  %p154_p7 = scmp.eq.s32.totalorder %s827_s22, 1 }
   0xd   : > { %p1314_p6 = por %p1556_p3, %p80_p2  ;;  %p1318_p8 = por %p148_p5, %p74_p0 }
   0xe   : > { %p828_p9 = scmp.ge.s32.totalorder %s1228_s20, 1  ;;  %p1323_p10 = por %p154_p7, %p80_p2 }
   0xf   : > { %s1565_s24 = scalar_select %p1314_p6, 1, 0 }
  0x10   : > { %s1566_s25 = scalar_select %p1318_p8, 1, 0 }
  0x11   : > { %s1567_s26 = scalar_select %p1323_p10, 1, 0 }
  0x12   : > { %p161_p11 = scmp.lt.s32.totalorder %s1228_s20, 3  ;;  %s1230_s28 = smov [#allocation8]  }
  0x13   : > { %1568 = sst [smem:[#allocation18_spill]] %s1567_s26  ;;  %s189_s29 = sshll.u32 %s1230_s28, 4  ;;  %s190_s29 = int_to_ptr.vmem [resolvable:$true] %s189_s29 }
  0x14   : > { %p1328_p12 = pnand %p828_p9, %p161_p11  ;;  %p918_p1 = scmp.lt.s32.totalorder %s1228_s20, 2 }
  0x15   : > { %s1020_s8 = scalar_lea.hbm %s1553_s2, 3072 }
  0x16   : > { %s1569_s27 = scalar_select %p1328_p12, 1, 0 }
  0x17   : > { %p897_p13 = pneg %p1328_p12  ;;  %p1344_p2 = pnand %p918_p1, %p1307_p4 }
  0x18   : > { %p1021_p7 = scmp.ne.s32.totalorder %s1553_s2, %s1020_s8 }
  0x19   : > { %p1338_p5 = pnand %p897_p13, %p1556_p3  ;;  %p1027_p13 = scmp.lt.u32.totalorder %s1020_s8, %s1553_s2 }
  0x1a   : > { %s1571_s5 = scalar_select %p1344_p2, 1, 0 }
  0x1b   : > { %p1356_p9 = pneg %p1338_p5 }
  0x1d   : > { %p1023_p11 = pnand %p1356_p9, %p1021_p7 }
  0x1f   : > { %p1024_p4 = pneg %p1023_p11 }
  0x21   : > { %p1029_p1 = pnand %p1027_p13, %p1024_p4 }
  0x23   : > { %1032 = shalt.err (!%p1029_p1)
}
  0x24   : > { %s1033_s14 = scalar_lea.vmem %s190_s29, 3072  ;;  %p1041_p8 = scmp.lt.s32.totalorder %s190_s29, %s190_s29 }
  0x25   : > { %p1034_p0 = scmp.ne.s32.totalorder %s190_s29, %s1033_s14  ;;  %p1042_p6 = scmp.lt.s32.totalorder %s1033_s14, %s1033_s14 }
  0x27   : > { %p1036_p3 = pnand %p1034_p0, %p1356_p9  ;;  %p1043_p12 = por %p1042_p6, %p1041_p8 }
  0x29   : > { %p1037_p10 = pneg %p1036_p3 }
  0x2b   : > { %p1044_p2 = pnand %p1043_p12, %p1037_p10 }
  0x2d   : > { %1047 = shalt.err (!%p1044_p2)
}
  0x2e   : > { %s1231_s22 = smov 128   ;;  %s1232_s23 = smov 8  }
  0x2f   : > { %903 = dma.hbm_to_vmem [thread:$0]  (!%p1338_p5), %s1553_s2, 3072, %s190_s29, [#allocation7], %s1231_s22, %s1231_s22, %s1232_s23  }
  0x30   : > { %s1233_s7 = smov [#allocation3]   ;;  %s1048_s12 = scalar_lea.hbm %s1551_s0, 256 }
  0x31   : > { %s176_s8 = sshll.u32 %s1233_s7, 4  ;;  %p1049_p3 = scmp.ne.s32.totalorder %s1551_s0, %s1048_s12  ;;  %s177_s8 = int_to_ptr.vmem [resolvable:$true] %s176_s8 }
  0x32   : > { %p1055_p10 = scmp.lt.u32.totalorder %s1048_s12, %s1551_s0 }
  0x33   : > { %p1051_p6 = pnand %p1049_p3, %p1356_p9 }
  0x35   : > { %p1052_p8 = pneg %p1051_p6 }
  0x37   : > { %p1057_p12 = pnand %p1055_p10, %p1052_p8 }
  0x39   : > { %1060 = shalt.err (!%p1057_p12)
}
  0x3a   : > { %s1061_s29 = scalar_lea.vmem %s177_s8, 256  ;;  %p1069_p11 = scmp.lt.s32.totalorder %s177_s8, %s177_s8 }
  0x3b   : > { %p1062_p0 = scmp.ne.s32.totalorder %s177_s8, %s1061_s29  ;;  %p1070_p4 = scmp.lt.s32.totalorder %s1061_s29, %s1061_s29 }
  0x3d   : > { %p1064_p2 = pnand %p1062_p0, %p1356_p9  ;;  %p1071_p13 = por %p1070_p4, %p1069_p11 }
  0x3f   : > { %p1065_p7 = pneg %p1064_p2 }
  0x41   : > { %p1072_p1 = pnand %p1071_p13, %p1065_p7 }
  0x43   : > { %1075 = shalt.err (!%p1072_p1)
}
  0x44   : > { %s1234_s22 = smov 64   ;;  %s1235_s23 = smov 4  }
  0x45   : > { %900 = dma.hbm_to_vmem [thread:$0]  (!%p1338_p5), %s1551_s0, 256, %s177_s8, [#allocation4], %s1234_s22, %s1234_s22, %s1235_s23  }
  0x46   : > { %s1236_s28 = smov [#allocation9]   ;;  %s1076_s10 = scalar_lea.hbm %s1554_s3, 32 }
  0x47   : > { %s203_s6 = sshll.u32 %s1236_s28, 4  ;;  %p1077_p3 = scmp.ne.s32.totalorder %s1554_s3, %s1076_s10  ;;  %s204_s6 = int_to_ptr.vmem [resolvable:$true] %s203_s6 }
  0x48   : > { %p1083_p10 = scmp.lt.u32.totalorder %s1076_s10, %s1554_s3 }
  0x49   : > { %p1079_p6 = pnand %p1077_p3, %p1356_p9 }
  0x4b   : > { %p1080_p8 = pneg %p1079_p6 }
  0x4d   : > { %p1085_p12 = pnand %p1083_p10, %p1080_p8 }
  0x4f   : > { %1088 = shalt.err (!%p1085_p12)
}
  0x50   : > { %s1089_s8 = scalar_lea.vmem %s204_s6, 32  ;;  %p1097_p11 = scmp.lt.s32.totalorder %s204_s6, %s204_s6 }
  0x51   : > { %p1090_p0 = scmp.ne.s32.totalorder %s204_s6, %s1089_s8  ;;  %p1098_p4 = scmp.lt.s32.totalorder %s1089_s8, %s1089_s8 }
  0x53   : > { %p1092_p2 = pnand %p1090_p0, %p1356_p9  ;;  %p1099_p13 = por %p1098_p4, %p1097_p11 }
  0x55   : > { %p1093_p7 = pneg %p1092_p2 }
  0x57   : > { %p1100_p1 = pnand %p1099_p13, %p1093_p7 }
  0x59   : > { %1103 = shalt.err (!%p1100_p1)
}
  0x5a   : > { %906 = dma.hbm_to_vmem [thread:$0]  (!%p1338_p5), %s1554_s3, 32, %s204_s6, [#allocation10]  }
  0x5b   : > { %s34_s11 = sadd.s32 1, %s1224_s19  ;;  %s67_s28 = sadd.s32 1, %s1216_s17 }
  0x5c   : > { %p36_p9 = scmp.ge.s32.totalorder %s34_s11, 2  ;;  %s214_s7 = sand.u32 1, %s1228_s20  }
  0x5d   : > { %s216_s9 = sand.u32 1, %s1216_s17   ;;  %s879_s10 = sshll.u32 %s1224_s19, 7 }
  0x5e   : > { %s1594_s11 = smov (%p36_p9, %s34_s11), 0  ;;  %s833_s30 = sshll.u32 %s216_s9, 3 }
  0x5f   : > { %s64_s12 = ssub.s32 %s1224_s19, %s1594_s11  ;;  %s1423_s29 = scalar_lea.hbm %s1552_s1, %s879_s10 }
  0x60   : > { %p65_p3 = scmp.eq.s32.totalorder %s64_s12, 0  ;;  %s218_s6 = scalar_lea.vmem [#allocation6], %s833_s30 }
  0x61   : > { %s225_s8 = sshll.u32 %s218_s6, 4  ;;  %s1430_s26 = scalar_lea.sflag [#allocation7], %s214_s7  ;;  %s1428_s8 = int_to_ptr.vmem [resolvable:$true] %s225_s8 }
  0x62   : > { %s1426_s15 = scalar_select %p65_p3, %s1216_s17, %s67_s28  }
  0x63   : > { %s1104_s9 = scalar_lea.hbm %s1423_s29, 128  ;;  %p1573_p6 = scmp.ne.s32.totalorder %s1571_s5, 0 }
  0x64   : > { %p1105_p5 = scmp.ne.s32.totalorder %s1423_s29, %s1104_s9  ;;  %s1109_s13 = scalar_lea.hbm %s1552_s1, 256 }
  0x65   : > { %p1106_p8 = pneg %p1573_p6  ;;  %p1110_p0 = scmp.lt.u32.totalorder %s1423_s29, %s1552_s1 }
  0x66   : > { %p1111_p2 = scmp.lt.u32.totalorder %s1109_s13, %s1104_s9  ;;  %p1113_p11 = scmp.lt.u32.totalorder %s1104_s9, %s1423_s29 }
  0x67   : > { %p1107_p10 = pnand %p1106_p8, %p1105_p5 }
  0x68   : > { %p1112_p7 = por %p1111_p2, %p1110_p0 }
  0x69   : > { %p1108_p12 = pneg %p1107_p10 }
  0x6a   : > { %p1114_p4 = por %p1113_p11, %p1112_p7 }
  0x6c   : > { %p1115_p13 = pnand %p1114_p4, %p1108_p12 }
  0x6e   : > { %1118 = shalt.err (!%p1115_p13)
}
  0x6f   : > { %s1119_s28 = scalar_lea.vmem %s1428_s8, 128  ;;  %s1237_s7 = smov [#allocation6]  }
  0x70   : > { %p1120_p1 = scmp.ne.s32.totalorder %s1428_s8, %s1119_s28  ;;  %s1124_s6 = sshll.u32 %s1237_s7, 4  ;;  %s1125_s6 = int_to_ptr.vmem [resolvable:$false] %s1124_s6 }
  0x71   : > { %s1126_s10 = scalar_lea.vmem %s1125_s6, 256  ;;  %p1127_p5 = scmp.lt.s32.totalorder %s1428_s8, %s1125_s6 }
  0x72   : > { %p1122_p9 = pnand %p1120_p1, %p1106_p8  ;;  %p1128_p10 = scmp.lt.s32.totalorder %s1126_s10, %s1119_s28 }
  0x74   : > { %p1123_p3 = pneg %p1122_p9  ;;  %p1129_p0 = por %p1128_p10, %p1127_p5 }
  0x76   : > { %p1130_p2 = pnand %p1129_p0, %p1123_p3 }
  0x78   : > { %1133 = shalt.err (!%p1130_p2)
}
  0x79   : > { %910 = dma.hbm_to_vmem [thread:$0]  (!%p1573_p6), %s1423_s29, 128, %s1428_s8, %s1430_s26, %s1234_s22, %s1234_s22, %s1235_s23  }
  0x7a   : > { %p1574_p8 = scmp.ne.s32.totalorder %s1569_s27, 0 }
  0x7b   : > { %p1575_p12 = scmp.eq.s32.totalorder (!%p1574_p8), %s1298_s21, 0 }
  0x7c   : > { %237 = sbr.rel (%p1574_p8) target bundleno = 640 (0x280), region = 36 }
  0x83   : > { %1187 = dma.done.wait (%p1575_p12), [#allocation4], 256   ;;  %p1576_p7 = pmov %p1575_p12 }
  0x84   : > { %s243_s5 = sand.u32 1, %s1298_s21   ;;  %s1469_s9 = sand.u32 1, %s1212_s16  }
  0x85   : > { %1189 = vsyncadd (%p1576_p7), [#allocation4], 4294967040  ;;  %s838_s12 = sshll.u32 %s1469_s9, 3  ;;  %s244_s13 = scalar_lea.sflag [#allocation7], %s243_s5 }
  0x86   : > { %s1472_s30 = scalar_lea.vmem [#allocation6], %s838_s12  ;;  %p1577_p6 = scmp.ne.s32.totalorder %s1565_s24, 0 }
  0x88   : > { %1191 = dma.done.wait (%p1577_p6), %s244_s13, 128  }
  0x89   : > { %1193 = vsyncadd (%p1577_p6), %s244_s13, 4294967168  ;;  %p1578_p11 = pmov %p1576_p7 }
  0x8a   : > { %p1579_p4 = pmov %p1576_p7 }
  0x8b   : > { %1195 = dma.done.wait (%p1578_p11), [#allocation7], 3072  }
  0x8c   : > { %1197 = vsyncadd (%p1579_p4), [#allocation7], 4294964224  ;;  %p1580_p13 = pmov %p1579_p4 }
  0x8d   : > { %p1581_p1 = pmov %p1579_p4 }
  0x8e   : > { %1199 = dma.done.wait (%p1580_p13), [#allocation10], 32  }
  0x8f   : > { %1201 = vsyncadd (%p1581_p1), [#allocation10], 4294967264  ;;  %v1238_v0 = vmov 0   ;;  %v981_v1 = vld [vmem:[#allocation8 + $0x4] ss:$8 sps:$4 sm:$0xff]   ;;  %v999_v17 = vld [vmem:[%s1472_s30] sm:$0xff]   ;;  %v596_v46 = vlaneseq }
  0x90   : > { %377 = vmatprep.mubr.bf16.mxu0 %v1238_v0  ;;  %473 = vmatprep.mubr.bf16.mxu1 %v1238_v0  ;;  %v983_v2 = vld [vmem:[#allocation8] ss:$8 sps:$4 sm:$0xff]   ;;  %v984_v3 = vld [vmem:[#allocation8 + $0x14] ss:$8 sps:$4 sm:$0xff]   ;;  %v986_v4 = vld [vmem:[#allocation8 + $0x10] ss:$8 sps:$4 sm:$0xff]  }
  0x91   : > { %345 = vmatprep.subr.bf16.mxu0 %v981_v1  ;;  %v987_v5 = vld [vmem:[#allocation8 + $0x24] ss:$8 sps:$4 sm:$0xff]   ;;  %v992_v7 = vld [vmem:[#allocation8 + $0x40] ss:$8 sps:$4 sm:$0xff]   ;;  %v995_v9 = vld [vmem:[#allocation8 + $0x54] ss:$8 sps:$4 sm:$0xff]  }
  0x92   : > { %346 = vmatpush1.bf16.msra.mxu0 %v983_v2  ;;  %v989_v6 = vld [vmem:[#allocation8 + $0x44] ss:$8 sps:$4 sm:$0xff]   ;;  %v991_v8 = vld [vmem:[#allocation8 + $0x20] ss:$8 sps:$4 sm:$0xff]   ;;  %v998_v10 = vld [vmem:[#allocation8 + $0x50] ss:$8 sps:$4 sm:$0xff]  }
  0x93   : > { %347 = vmatprep.subr.bf16.mxu0 %v984_v3  ;;  %441 = vmatprep.subr.bf16.mxu1 %v989_v6  ;;  %v993_v11 = vld [vmem:[#allocation8 + $0x34] ss:$8 sps:$4 sm:$0xff]   ;;  %v1000_v12 = vld [vmem:[#allocation8 + $0x64] ss:$8 sps:$4 sm:$0xff]   ;;  %v997_v13 = vld [vmem:[#allocation8 + $0x30] ss:$8 sps:$4 sm:$0xff]  }
  0x94   : > { %442 = vmatpush1.bf16.msra.mxu1 %v992_v7  ;;  %v1004_v14 = vld [vmem:[#allocation8 + $0x84] ss:$8 sps:$4 sm:$0xff]   ;;  %v1005_v15 = vld [vmem:[#allocation8 + $0x60] ss:$8 sps:$4 sm:$0xff]   ;;  %v1006_v16 = vld [vmem:[#allocation8 + $0x74] ss:$8 sps:$4 sm:$0xff]  }
  0x95   : > { %443 = vmatprep.subr.bf16.mxu1 %v995_v9  ;;  %vm341_vm0 = vcmask 523264   ;;  %v1002_v18 = vld [vmem:[#allocation8 + $0x80] ss:$8 sps:$4 sm:$0xff]   ;;  %v1011_v19 = vld [vmem:[#allocation8 + $0x70] ss:$8 sps:$4 sm:$0xff]   ;;  %vm616_vm1 = vcmask 392192  }
  0x96   : > { %348 = vmatpush1.bf16.msra.mxu0 %v986_v4  ;;  %v1010_v20 = vld [vmem:[#allocation8 + $0x94] ss:$8 sps:$4 sm:$0xff]   ;;  %v1008_v21 = vld [vmem:[#allocation8 + $0x90] ss:$8 sps:$4 sm:$0xff]   ;;  %v1014_v22 = vld [vmem:[#allocation8 + $0xa4] ss:$8 sps:$4 sm:$0xff]  }
  0x97   : > { %349 = vmatprep.subr.bf16.mxu0 %v987_v5  ;;  %v1012_v23 = vld [vmem:[#allocation8 + $0xa0] ss:$8 sps:$4 sm:$0xff]   ;;  %v1017_v24 = vld [vmem:[#allocation8 + $0xb4] ss:$8 sps:$4 sm:$0xff]   ;;  %v1015_v25 = vld [vmem:[#allocation8 + $0xb0] ss:$8 sps:$4 sm:$0xff]  }
  0x98   : > { %444 = vmatpush1.bf16.msra.mxu1 %v998_v10  ;;  %v1018_v44 = vld [vmem:[#allocation3] sm:$0xff]   ;;  %v1019_v45 = vld [vmem:[#allocation3 + $0x8] sm:$0xff]   ;;  %v597_v47 = vshrl.u32 %v596_v46, 7  ;;  %s841_s21 = sshll.u32 %s1469_s9, 6  ;;  %s880_s22 = sshll.u32 %s1220_s18, 10 }
  0x99   : > { %445 = vmatprep.subr.bf16.mxu1 %v1000_v12  ;;  %v594_v49 = vld [vmem:[#allocation9] sm:$0x3]  ;;  %s279_s24 = scalar_lea.vmem [#allocation11], %s841_s21  ;;  %s1502_s8 = scalar_lea.hbm %s1555_s4, %s880_s22 }
  0x9a   : > { %350 = vmatpush1.bf16.msra.mxu0 %v991_v8  ;;  %v598_v48 = vsub.s32 0, %v597_v47  ;;  %v602_v50 = vsub.s32 1, %v597_v47  ;;  %s709_s27 = sshll.u32 %s279_s24, 4  ;;  %s693_s18 = scalar_lea.sflag [#allocation5], %s1469_s9  ;;  %s1497_s27 = int_to_ptr.vmem [resolvable:$true] %s709_s27 }
  0x9b   : > { %351 = vmatprep.subr.bf16.mxu0 %v993_v11  ;;  %s1134_s26 = scalar_lea.vmem %s1497_s27, 1024  ;;  %p1582_p3 = scmp.ne.s32.totalorder %s1566_s25, 0 }
  0x9c   : > { %446 = vmatpush1.bf16.msra.mxu1 %v1005_v15  ;;  %v599_v51 = vrot.slane %v594_v49, %v598_v48  ;;  %v603_v52 = vrot.slane %v594_v49, %v602_v50  ;;  %p1135_p9 = scmp.ne.s32.totalorder %s1497_s27, %s1134_s26  ;;  %s1239_s14 = smov [#allocation11]  }
  0x9d   : > { %447 = vmatprep.subr.bf16.mxu1 %v1006_v16  ;;  %s1138_s28 = sshll.u32 %s1239_s14, 4  ;;  %s1139_s28 = int_to_ptr.vmem [resolvable:$false] %s1138_s28 }
  0x9e   : > { %352 = vmatpush1.bf16.msra.mxu0 %v997_v13  ;;  %p1136_p5 = pnand %p1135_p9, %p1582_p3  ;;  %s1140_s7 = scalar_lea.vmem %s1139_s28, 2048 }
  0x9f   : > { %537 = vmatprep.subr.bf16.mxu0 %v1004_v14  ;;  %p1141_p0 = scmp.lt.s32.totalorder %s1497_s27, %s1139_s28  ;;  %p1142_p2 = scmp.lt.s32.totalorder %s1140_s7, %s1134_s26 }
  0xa0   : > { %448 = vmatpush1.bf16.msra.mxu1 %v1011_v19  ;;  %p1137_p10 = pneg %p1136_p5 }
  0xa1   : > { %851 = vmatmul.mubr.msk.bf16.vlgmr.msra.gmra.mrb[0].mxu0 %vm341_vm0, %v999_v17  ;;  %p1143_p8 = por %p1142_p2, %p1141_p0 }
  0xa2   : > { %538 = vmatpush1.bf16.msra.mxu0 %v1002_v18  ;;  %569 = vmatprep.mubr.bf16.mxu0 %v1238_v0 }
  0xa3   : > { %539 = vmatprep.subr.bf16.mxu0 %v1010_v20  ;;  %860 = vmatmul.mubr.msk.bf16.vlgmr.msra.gmra.mrb[0].mxu1 %vm341_vm0, %v999_v17  ;;  %p1144_p12 = pnand %p1143_p8, %p1137_p10 }
  0xa4   : > { %655 = vmatprep.mubr.bf16.mxu1 %v1238_v0 }
  0xa6   : > { %540 = vmatpush1.bf16.msra.mxu0 %v1008_v21 }
  0xa7   : > { %541 = vmatprep.subr.bf16.mxu0 %v1014_v22 }
  0xaa   : > { %542 = vmatpush1.bf16.msra.mxu0 %v1012_v23 }
  0xab   : > { %543 = vmatprep.subr.bf16.mxu0 %v1017_v24 }
  0xae   : > { %544 = vmatpush1.bf16.msra.mxu0 %v1015_v25 }
  0xb1   : > { %869 = vmatmul.mubr.msk.bf16.vlgmr.msra.gmra.mrb[4].mxu0 %vm341_vm0, %v999_v17 }
 0x174   : > { %v379_v26 = vpop.f32.mrb[0].mxu0 }
 0x175   : > { %v381_v27 = vpop.f32.mrb[1].mxu0 }
 0x176   : > { %v383_v28 = vpop.f32.mrb[2].mxu0  ;;  %v475_v32 = vpop.f32.mrb[0].mxu1 }
 0x177   : > { %v388_v29 = vpack.c.bf16 %v383_v28, %v379_v26  ;;  %v385_v30 = vpop.f32.mrb[3].mxu0  ;;  %v477_v33 = vpop.f32.mrb[1].mxu1 }
 0x178   : > { %v389_v31 = vpack.c.bf16 %v385_v30, %v381_v27  ;;  %v479_v34 = vpop.f32.mrb[2].mxu1 }
 0x179   : > { %v484_v35 = vpack.c.bf16 %v479_v34, %v475_v32  ;;  %v481_v36 = vpop.f32.mrb[3].mxu1 }
 0x17a   : > { %623 = vmatprep.subr.bf16.mxu1 %v389_v31  ;;  %v485_v37 = vpack.c.bf16 %v481_v36, %v477_v33 }
 0x17b   : > { %624 = vmatpush1.bf16.msra.mxu1 %v388_v29 }
 0x17c   : > { %625 = vmatprep.subr.bf16.mxu1 %v485_v37 }
 0x17f   : > { %626 = vmatpush1.bf16.msra.mxu1 %v484_v35 }
 0x184   : > { %v571_v38 = vpop.f32.mrb[4].mxu0 }
 0x185   : > { %v573_v39 = vpop.f32.mrb[5].mxu0 }
 0x186   : > { %v575_v40 = vpop.f32.mrb[6].mxu0 }
 0x187   : > { %v580_v41 = vpack.c.bf16 %v575_v40, %v571_v38  ;;  %v577_v42 = vpop.f32.mrb[7].mxu0 }
 0x188   : > { %v581_v43 = vpack.c.bf16 %v577_v42, %v573_v39 }
 0x18a   : > { %627 = vmatprep.subr.bf16.mxu1 %v581_v43 }
 0x18b   : > { %628 = vmatpush1.bf16.msra.mxu1 %v580_v41 }
 0x18e   : > { %872 = vmatmul.mubr.msk.bf16.vlgmr.msra.gmra.mrb[4].mxu1 %vm616_vm1, %v1018_v44 }
 0x18f   : > { %665 = vmatprep.mubr.bf16.mxu1 %v1238_v0 }
 0x196   : > { %873 = vmatmul.mubr.msk.bf16.gmra.mrb[8].mxu1 %vm616_vm1, %v1019_v45 }
 0x261   : > { %v657_v53 = vpop.f32.mrb[4].mxu1 }
 0x262   : > { %v658_v54 = vadd.f32 %v657_v53, %v599_v51  ;;  %v659_v55 = vpop.f32.mrb[5].mxu1 }
 0x263   : > { %v660_v56 = vadd.f32 %v659_v55, %v603_v52  ;;  %v661_v57 = vpop.f32.mrb[6].mxu1 }
 0x264   : > { %v676_v58 = vmax.f32 %v658_v54, 0.0  ;;  %v662_v59 = vadd.f32 %v661_v57, %v599_v51  ;;  %v663_v60 = vpop.f32.mrb[7].mxu1 }
 0x265   : > { %v677_v61 = vmax.f32 %v660_v56, 0.0  ;;  %v664_v62 = vadd.f32 %v663_v60, %v603_v52 }
 0x266   : > { %684 = vst [vmem:[%s279_s24] sm:$0xff] %v676_v58  ;;  %v678_v63 = vmax.f32 %v662_v59, 0.0 }
 0x267   : > { %685 = vst [vmem:[%s279_s24 + $0x8] sm:$0xff] %v677_v61  ;;  %v679_v0 = vmax.f32 %v664_v62, 0.0 }
 0x268   : > { %686 = vst [vmem:[%s279_s24 + $0x10] sm:$0xff] %v678_v63 }
 0x269   : > { %687 = vst [vmem:[%s279_s24 + $0x18] sm:$0xff] %v679_v0  ;;  %v667_v1 = vpop.f32.mrb[8].mxu1 }
 0x26a   : > { %v668_v2 = vadd.f32 %v667_v1, %v599_v51  ;;  %v669_v3 = vpop.f32.mrb[9].mxu1 }
 0x26b   : > { %v670_v4 = vadd.f32 %v669_v3, %v603_v52  ;;  %v671_v5 = vpop.f32.mrb[10].mxu1 }
 0x26c   : > { %v680_v6 = vmax.f32 %v668_v2, 0.0  ;;  %v672_v7 = vadd.f32 %v671_v5, %v599_v51  ;;  %v673_v8 = vpop.f32.mrb[11].mxu1 }
 0x26d   : > { %v681_v9 = vmax.f32 %v670_v4, 0.0  ;;  %v674_v10 = vadd.f32 %v673_v8, %v603_v52 }
 0x26e   : > { %688 = vst [vmem:[%s279_s24 + $0x20] sm:$0xff] %v680_v6  ;;  %v682_v11 = vmax.f32 %v672_v7, 0.0 }
 0x26f   : > { %689 = vst [vmem:[%s279_s24 + $0x28] sm:$0xff] %v681_v9  ;;  %v683_v12 = vmax.f32 %v674_v10, 0.0 }
 0x270   : > { %690 = vst [vmem:[%s279_s24 + $0x30] sm:$0xff] %v682_v11 }
 0x271   : > { %691 = vst [vmem:[%s279_s24 + $0x38] sm:$0xff] %v683_v12 }
 0x272   : > { %1147 = shalt.err (!%p1144_p12)
}
 0x273   : > { %s1148_s6 = scalar_lea.hbm %s1502_s8, 1024  ;;  %s1152_s12 = scalar_lea.hbm %s1555_s4, 2048 }
 0x274   : > { %p1149_p7 = scmp.ne.s32.totalorder %s1502_s8, %s1148_s6  ;;  %p1153_p4 = scmp.lt.u32.totalorder %s1502_s8, %s1555_s4 }
 0x275   : > { %p1154_p13 = scmp.lt.u32.totalorder %s1152_s12, %s1148_s6  ;;  %p1156_p9 = scmp.lt.u32.totalorder %s1148_s6, %s1502_s8 }
 0x276   : > { %p1150_p6 = pnand %p1149_p7, %p1582_p3 }
 0x277   : > { %p1155_p1 = por %p1154_p13, %p1153_p4 }
 0x278   : > { %p1151_p11 = pneg %p1150_p6 }
 0x279   : > { %p1157_p5 = por %p1156_p9, %p1155_p1 }
 0x27b   : > { %p1158_p10 = pnand %p1157_p5, %p1151_p11 }
 0x27d   : > { %1161 = shalt.err (!%p1158_p10)
}
 0x27e   : > { %s1240_s21 = smov 256   ;;  %s1241_s24 = smov 16  }
 0x27f   : > { %895 = dma.vmem_to_hbm [thread:$0]  (%p1582_p3), %s1497_s27, 1024, %s1502_s8, %s693_s18, %s1240_s21, %s1240_s21, %s1241_s24  }
 0x280 PF: > { %s1583_s22 = sld [smem:[#allocation17_spill]]  ;;  %s1584_s23 = sld [smem:[#allocation18_spill]] }
 0x281   : > { %p1586_p2 = scmp.ge.s32.totalorder %s1228_s20, 2 }
 0x286   : > { %s724_s29 = sand.u32 1, %s1583_s22   ;;  %p1585_p0 = scmp.ne.s32.totalorder %s1584_s23, 0 }
 0x287   : > { %s725_s26 = scalar_lea.sflag [#allocation5], %s724_s29 }
 0x288   : > { %p912_p8 = pnand %p1586_p2, %p1585_p0 }
 0x28a   : > { %1203 = dma.done.wait (!%p912_p8), %s725_s26, 1024  }
 0x28b   : > { %1205 = vsyncadd (!%p912_p8), %s725_s26, 4294966272  ;;  %s22_s20 = sadd.s32 1, %s1228_s20   ;;  %s1587_s14 = smov %s1426_s15 }
 0x28c   : > { %p19_p12 = scmp.ge.s32.totalorder %s22_s20, 4   ;;  %s1588_s15 = smov %s1212_s16 }
 0x28d   : > { %s1589_s16 = smov %s1216_s17  ;;  %s1590_s17 = smov %s1587_s14 }
 0x28e   : > { %s1591_s18 = smov %s1224_s19  ;;  %s1592_s19 = smov %s1594_s11 }
 0x28f   :  { %21 = sbr.rel (!%p19_p12) target bundleno = 8 (0x8), region = 101 }
 0x296   :  { %730 = vsyncpa [#allocation4], 1 }
 0x297   :  { %732 = vsyncpa [#allocation4 + $0x1], 1 }
 0x298   :  { %733 = vsyncpa [#allocation7], 1 }
 0x299   :  { %735 = vsyncpa [#allocation7 + $0x1], 1 }
 0x29a   :  { %736 = vsyncpa [#allocation10], 1 }
 0x29b   :  { %737 = vsyncpa [#allocation5], 1 }
 0x29c   :  { %739 = vsyncpa [#allocation5 + $0x1], 1 }

</bundles_post_ra>
